<compile_context>
chip_gen: v6e
topology: v6e:2x2x1
jax: 0.10.0
libtpu: 0.0.40
codegen_flags: <defaults>
</compile_context>

<pallas_src>
import math

import jax
import jax.numpy as jnp
from jax.experimental import pallas as pl
from jax.experimental.pallas import tpu as pltpu


def _attn_layer_kernel(q_ref, k_ref, v_ref, w_ref, b_ref, out_ref, attn_ref):
    # q (B, L, D); k/v (B, S, D); w_ref (4, D, D); b_ref (4, 1, D).
    q = q_ref[...]
    k = k_ref[...]
    v = v_ref[...]
    B, L, D = q.shape
    S = k.shape[1]

    # Packed weights/biases: static leading-dim indexing is a free view.
    wq, wk, wv, wo = w_ref[0], w_ref[1], w_ref[2], w_ref[3]      # (D, D)
    bq, bk, bv, bo = b_ref[0], b_ref[1], b_ref[2], b_ref[3]      # (1, D)

    # Collapse batch into rows -> one full-width MXU matmul per projection.
    q2 = q.reshape(B * L, D)
    k2 = k.reshape(B * S, D)
    v2 = v.reshape(B * S, D)

    # 1/sqrt(D) folded into the query projection (cheaper than scaling the
    # (B, L, S) score tensor once S > D; free at these sizes).
    scale = 1.0 / math.sqrt(D)
    qp = (jnp.dot(q2, wq, preferred_element_type=jnp.float32) + bq) * scale
    kp = jnp.dot(k2, wk, preferred_element_type=jnp.float32) + bk
    vp = jnp.dot(v2, wv, preferred_element_type=jnp.float32) + bv

    qp = qp.reshape(B, L, D)
    kp = kp.reshape(B, S, D)
    vp = vp.reshape(B, S, D)

    # Scaled dot-product attention over the full embedding dim (no head split).
    # Contraction on the last dims of both operands -> no kp transpose.
    scores = jnp.einsum('bld,bsd->bls', qp, kp,
                        preferred_element_type=jnp.float32)       # (B, L, S)

    # Numerically-stable softmax along the key axis; reciprocal on the EUP.
    m = jnp.max(scores, axis=-1, keepdims=True)
    e = jnp.exp(scores - m)
    denom = jnp.sum(e, axis=-1, keepdims=True)
    attn = e * pl.reciprocal(denom, approx=True)                  # (B, L, S)

    ctx = jnp.einsum('bls,bsd->bld', attn, vp,
                     preferred_element_type=jnp.float32)          # (B, L, D)

    # Output projection, again one row-collapsed MXU matmul.
    out = (jnp.dot(ctx.reshape(B * L, D), wo,
                   preferred_element_type=jnp.float32) + bo).reshape(B, L, D)

    # Direct block stores — no in-kernel flatten/relayout.
    out_ref[...] = out.astype(out_ref.dtype)
    attn_ref[...] = attn.astype(attn_ref.dtype)


def recurrent_attention_layer(queries, keys, values, params, attn_mask=None):
    """Pallas implementation of Recurrent_AttentionLayer_embed_dimension.forward
    (mix=False, attn_mask ignored). Returns (out, attn)."""
    del attn_mask  # TODO(synk): masked (causal/padding) attention not implemented.
    B, L, D = queries.shape
    _, S, _ = keys.shape

    # Pack 4 weight matrices / 4 biases into single inputs (one DMA each).
    w_packed = jnp.stack(
        [params["wq"], params["wk"], params["wv"], params["wo"]])   # (4, D, D)
    b_packed = jnp.stack(
        [params["bq"], params["bk"], params["bv"], params["bo"]])   # (4, 1, D)

    vmem = pl.BlockSpec(memory_space=pltpu.MemorySpace.VMEM)
    out, attn = pl.pallas_call(
        _attn_layer_kernel,
        out_shape=(
            jax.ShapeDtypeStruct((B, L, D), jnp.float32),
            jax.ShapeDtypeStruct((B, L, S), jnp.float32),
        ),
        in_specs=[vmem, vmem, vmem, vmem, vmem],
        out_specs=(vmem, vmem),
    )(queries, keys, values, w_packed, b_packed)
    return out, attn


def init_params(key, d_model):
    """Deterministic PyTorch-Linear-style init. Weights stored as (in, out)."""
    bound = 1.0 / math.sqrt(d_model)
    names = ["wq", "bq", "wk", "bk", "wv", "bv", "wo", "bo"]
    keys = jax.random.split(key, len(names))
    params = {}
    for i, name in enumerate(names):
        if name.startswith("w"):
            params[name] = jax.random.uniform(
                keys[i], (d_model, d_model), jnp.float32, -bound, bound)
        else:
            params[name] = jax.random.uniform(
                keys[i], (1, d_model), jnp.float32, -bound, bound)
    return params


def reference_forward(queries, keys, values, params):
    """Plain-JAX reference of the same forward pass (for verification)."""
    D = queries.shape[-1]
    qp = queries @ params["wq"] + params["bq"]
    kp = keys @ params["wk"] + params["bk"]
    vp = values @ params["wv"] + params["bv"]
    scores = jnp.einsum("bld,bsd->bls", qp, kp) / math.sqrt(D)
    attn = jax.nn.softmax(scores, axis=-1)
    ctx = jnp.einsum("bls,bsd->bld", attn, vp)
    out = ctx @ params["wo"] + params["bo"]
    return out, attn


if __name__ == "__main__":
    # Small, module-consistent shapes: d_feature=8, n_feature=4 -> d_model=32.
    B, L, S = 2, 16, 16
    d_feature, n_feature = 8, 4
    d_model = d_feature * n_feature  # 32

    key = jax.random.PRNGKey(0)
    kq, kk, kv, kp = jax.random.split(key, 4)
    queries = jax.random.normal(kq, (B, L, d_model), jnp.float32)
    keys_in = jax.random.normal(kk, (B, S, d_model), jnp.float32)
    values = jax.random.normal(kv, (B, S, d_model), jnp.float32)
    params = init_params(kp, d_model)

    out, attn = recurrent_attention_layer(queries, keys_in, values, params)
    jax.block_until_ready((out, attn))

    out_ref, attn_ref = reference_forward(queries, keys_in, values, params)
    # Tolerances loosened slightly for pl.reciprocal(approx=True) (EUP vrcp):
    # attention rows sum to 1 only to ~1e-3 relative accuracy.
    assert jnp.allclose(out, out_ref, atol=5e-3, rtol=5e-3)
    assert jnp.allclose(attn, attn_ref, atol=5e-3, rtol=5e-3)

    print("KERNEL_OK")
</pallas_src>

<mosaic_0001>
module attributes {stable_mosaic.version = 11 : i64} {
  func.func @_attn_layer_kernel(%arg0: memref<2x16x32xf32, #tpu.memory_space<vmem>>, %arg1: memref<2x16x32xf32, #tpu.memory_space<vmem>>, %arg2: memref<2x16x32xf32, #tpu.memory_space<vmem>>, %arg3: memref<4x32x32xf32, #tpu.memory_space<vmem>>, %arg4: memref<4x1x32xf32, #tpu.memory_space<vmem>>, %arg5: memref<2x16x32xf32, #tpu.memory_space<vmem>>, %arg6: memref<2x16x16xf32, #tpu.memory_space<vmem>>) attributes {dimension_semantics = [], scalar_prefetch = 0 : i64, scratch_operands = 0 : i64, tpu.core_type = #tpu.core_type<tc>} {
    %c0 = arith.constant 0 : index
    %c0_0 = arith.constant 0 : index
    %c0_1 = arith.constant 0 : index
    %0 = vector.load %arg0[%c0, %c0_0, %c0_1] : memref<2x16x32xf32, #tpu.memory_space<vmem>>, vector<2x16x32xf32>
    %c0_2 = arith.constant 0 : index
    %c0_3 = arith.constant 0 : index
    %c0_4 = arith.constant 0 : index
    %1 = vector.load %arg1[%c0_2, %c0_3, %c0_4] : memref<2x16x32xf32, #tpu.memory_space<vmem>>, vector<2x16x32xf32>
    %c0_5 = arith.constant 0 : index
    %c0_6 = arith.constant 0 : index
    %c0_7 = arith.constant 0 : index
    %2 = vector.load %arg2[%c0_5, %c0_6, %c0_7] : memref<2x16x32xf32, #tpu.memory_space<vmem>>, vector<2x16x32xf32>
    %c0_8 = arith.constant 0 : index
    %c0_9 = arith.constant 0 : index
    %c0_10 = arith.constant 0 : index
    %3 = vector.load %arg3[%c0_8, %c0_9, %c0_10] : memref<4x32x32xf32, #tpu.memory_space<vmem>>, vector<1x32x32xf32>
    %4 = vector.shape_cast %3 : vector<1x32x32xf32> to vector<32x32xf32>
    %c1 = arith.constant 1 : index
    %c0_11 = arith.constant 0 : index
    %c0_12 = arith.constant 0 : index
    %5 = vector.load %arg3[%c1, %c0_11, %c0_12] : memref<4x32x32xf32, #tpu.memory_space<vmem>>, vector<1x32x32xf32>
    %6 = vector.shape_cast %5 : vector<1x32x32xf32> to vector<32x32xf32>
    %c2 = arith.constant 2 : index
    %c0_13 = arith.constant 0 : index
    %c0_14 = arith.constant 0 : index
    %7 = vector.load %arg3[%c2, %c0_13, %c0_14] : memref<4x32x32xf32, #tpu.memory_space<vmem>>, vector<1x32x32xf32>
    %8 = vector.shape_cast %7 : vector<1x32x32xf32> to vector<32x32xf32>
    %c3 = arith.constant 3 : index
    %c0_15 = arith.constant 0 : index
    %c0_16 = arith.constant 0 : index
    %9 = vector.load %arg3[%c3, %c0_15, %c0_16] : memref<4x32x32xf32, #tpu.memory_space<vmem>>, vector<1x32x32xf32>
    %10 = vector.shape_cast %9 : vector<1x32x32xf32> to vector<32x32xf32>
    %c0_17 = arith.constant 0 : index
    %c0_18 = arith.constant 0 : index
    %c0_19 = arith.constant 0 : index
    %11 = vector.load %arg4[%c0_17, %c0_18, %c0_19] : memref<4x1x32xf32, #tpu.memory_space<vmem>>, vector<1x1x32xf32>
    %12 = vector.shape_cast %11 : vector<1x1x32xf32> to vector<1x32xf32>
    %c1_20 = arith.constant 1 : index
    %c0_21 = arith.constant 0 : index
    %c0_22 = arith.constant 0 : index
    %13 = vector.load %arg4[%c1_20, %c0_21, %c0_22] : memref<4x1x32xf32, #tpu.memory_space<vmem>>, vector<1x1x32xf32>
    %14 = vector.shape_cast %13 : vector<1x1x32xf32> to vector<1x32xf32>
    %c2_23 = arith.constant 2 : index
    %c0_24 = arith.constant 0 : index
    %c0_25 = arith.constant 0 : index
    %15 = vector.load %arg4[%c2_23, %c0_24, %c0_25] : memref<4x1x32xf32, #tpu.memory_space<vmem>>, vector<1x1x32xf32>
    %16 = vector.shape_cast %15 : vector<1x1x32xf32> to vector<1x32xf32>
    %c3_26 = arith.constant 3 : index
    %c0_27 = arith.constant 0 : index
    %c0_28 = arith.constant 0 : index
    %17 = vector.load %arg4[%c3_26, %c0_27, %c0_28] : memref<4x1x32xf32, #tpu.memory_space<vmem>>, vector<1x1x32xf32>
    %18 = vector.shape_cast %17 : vector<1x1x32xf32> to vector<1x32xf32>
    %19 = vector.shape_cast %0 : vector<2x16x32xf32> to vector<32x32xf32>
    %20 = vector.shape_cast %1 : vector<2x16x32xf32> to vector<32x32xf32>
    %21 = vector.shape_cast %2 : vector<2x16x32xf32> to vector<32x32xf32>
    %cst = arith.constant dense<0.000000e+00> : vector<32x32xf32>
    %22 = tpu.matmul %19, %4, %cst {dimension_numbers = #tpu.dot_dimension_numbers<[1], [0], [0], [1], [0, 0, 1, 1], [], []>} : vector<32x32xf32>, vector<32x32xf32>, vector<32x32xf32> -> vector<32x32xf32>
    %23 = vector.broadcast %12 : vector<1x32xf32> to vector<32x32xf32>
    %24 = arith.addf %22, %23 : vector<32x32xf32>
    %cst_29 = arith.constant 0.176776692 : f32
    %25 = vector.broadcast %cst_29 : f32 to vector<32x32xf32>
    %26 = arith.mulf %24, %25 : vector<32x32xf32>
    %cst_30 = arith.constant dense<0.000000e+00> : vector<32x32xf32>
    %27 = tpu.matmul %20, %6, %cst_30 {dimension_numbers = #tpu.dot_dimension_numbers<[1], [0], [0], [1], [0, 0, 1, 1], [], []>} : vector<32x32xf32>, vector<32x32xf32>, vector<32x32xf32> -> vector<32x32xf32>
    %28 = vector.broadcast %14 : vector<1x32xf32> to vector<32x32xf32>
    %29 = arith.addf %27, %28 : vector<32x32xf32>
    %cst_31 = arith.constant dense<0.000000e+00> : vector<32x32xf32>
    %30 = tpu.matmul %21, %8, %cst_31 {dimension_numbers = #tpu.dot_dimension_numbers<[1], [0], [0], [1], [0, 0, 1, 1], [], []>} : vector<32x32xf32>, vector<32x32xf32>, vector<32x32xf32> -> vector<32x32xf32>
    %31 = vector.broadcast %16 : vector<1x32xf32> to vector<32x32xf32>
    %32 = arith.addf %30, %31 : vector<32x32xf32>
    %33 = vector.shape_cast %26 : vector<32x32xf32> to vector<2x16x32xf32>
    %34 = vector.shape_cast %29 : vector<32x32xf32> to vector<2x16x32xf32>
    %35 = vector.shape_cast %32 : vector<32x32xf32> to vector<2x16x32xf32>
    "tpu.trace_start"() <{level = 10 : i32, message = "bld,bsd->bls"}> : () -> ()
    %cst_32 = arith.constant dense<0.000000e+00> : vector<2x16x16xf32>
    %36 = tpu.matmul %33, %34, %cst_32 {dimension_numbers = #tpu.dot_dimension_numbers<[2], [2], [1], [1], [0, 0, 0, 1, 1, 1], [0], [0]>} : vector<2x16x32xf32>, vector<2x16x32xf32>, vector<2x16x16xf32> -> vector<2x16x16xf32>
    "tpu.trace_stop"() : () -> ()
    %cst_33 = arith.constant dense<0xFF800000> : vector<2x16xf32>
    %37 = vector.multi_reduction <maximumf>, %36, %cst_33 [2] : vector<2x16x16xf32> to vector<2x16xf32>
    %38 = vector.shape_cast %37 : vector<2x16xf32> to vector<2x16x1xf32>
    %39 = vector.broadcast %38 : vector<2x16x1xf32> to vector<2x16x16xf32>
    %40 = arith.subf %36, %39 : vector<2x16x16xf32>
    %41 = math.exp %40 : vector<2x16x16xf32>
    %cst_34 = arith.constant dense<0.000000e+00> : vector<2x16xf32>
    %42 = vector.multi_reduction <add>, %41, %cst_34 [2] : vector<2x16x16xf32> to vector<2x16xf32>
    %43 = vector.shape_cast %42 : vector<2x16xf32> to vector<2x16x1xf32>
    %44 = tpu.reciprocal %43 {approx = true} : vector<2x16x1xf32> -> vector<2x16x1xf32>
    %45 = vector.broadcast %44 : vector<2x16x1xf32> to vector<2x16x16xf32>
    %46 = arith.mulf %41, %45 : vector<2x16x16xf32>
    "tpu.trace_start"() <{level = 10 : i32, message = "bls,bsd->bld"}> : () -> ()
    %cst_35 = arith.constant dense<0.000000e+00> : vector<2x16x32xf32>
    %47 = tpu.matmul %46, %35, %cst_35 {dimension_numbers = #tpu.dot_dimension_numbers<[2], [1], [1], [2], [0, 0, 0, 1, 1, 2], [0], [0]>} : vector<2x16x16xf32>, vector<2x16x32xf32>, vector<2x16x32xf32> -> vector<2x16x32xf32>
    "tpu.trace_stop"() : () -> ()
    %48 = vector.shape_cast %47 : vector<2x16x32xf32> to vector<32x32xf32>
    %cst_36 = arith.constant dense<0.000000e+00> : vector<32x32xf32>
    %49 = tpu.matmul %48, %10, %cst_36 {dimension_numbers = #tpu.dot_dimension_numbers<[1], [0], [0], [1], [0, 0, 1, 1], [], []>} : vector<32x32xf32>, vector<32x32xf32>, vector<32x32xf32> -> vector<32x32xf32>
    %50 = vector.broadcast %18 : vector<1x32xf32> to vector<32x32xf32>
    %51 = arith.addf %49, %50 : vector<32x32xf32>
    %52 = vector.shape_cast %51 : vector<32x32xf32> to vector<2x16x32xf32>
    %c0_37 = arith.constant 0 : index
    %c0_38 = arith.constant 0 : index
    %c0_39 = arith.constant 0 : index
    %53 = vector.load %arg5[%c0_37, %c0_38, %c0_39] : memref<2x16x32xf32, #tpu.memory_space<vmem>>, vector<2x16x32xf32>
    tpu.vector_store %arg5[%c0_37, %c0_38, %c0_39], %52 {strides = array<i32>} : memref<2x16x32xf32, #tpu.memory_space<vmem>>, vector<2x16x32xf32>,
    %c0_40 = arith.constant 0 : index
    %c0_41 = arith.constant 0 : index
    %c0_42 = arith.constant 0 : index
    %54 = vector.load %arg6[%c0_40, %c0_41, %c0_42] : memref<2x16x16xf32, #tpu.memory_space<vmem>>, vector<2x16x16xf32>
    tpu.vector_store %arg6[%c0_40, %c0_41, %c0_42], %46 {strides = array<i32>} : memref<2x16x16xf32, #tpu.memory_space<vmem>>, vector<2x16x16xf32>,
    return
  }
}

</mosaic_0001>

<bundles_post_ra>
// kernel: tpu_custom_call.1
= control target key start
LH: loop header
LB: loop body
LE: loop exit
PB: predicated region body
PF: predicated region fallthrough
CT: control target
= control target key end

     0   :  { %12 = vsyncpa [#allocation3], 0  ;;  %s1431_s0 = inlined_call_operand.hbm [shape: f32[2,16,32], index: 0, kind: input, shape index: {}]   ;;  %s1432_s1 = inlined_call_operand.hbm [shape: f32[2,16,32], index: 1, kind: input, shape index: {}]   ;;  %s1433_s2 = inlined_call_operand.hbm [shape: f32[2,16,32], index: 2, kind: input, shape index: {}]   ;;  %s1434_s3 = inlined_call_operand.hbm [shape: f32[4,32,32], index: 3, kind: input, shape index: {}]   ;;  %s1435_s4 = inlined_call_operand.vmem [shape: f32[4,1,32], index: 4, kind: input, shape index: {}]   ;;  %s1436_s5 = inlined_call_operand.hbm [shape: f32[2,16,32], index: 5, kind: output, shape index: {0}]   ;;  %s1437_s6 = inlined_call_operand.hbm [shape: f32[2,16,16], index: 6, kind: output, shape index: {1}]  }
   0x1   :  { %13 = vsyncpa [#allocation6], 0 }
   0x2   :  { %14 = vsyncpa [#allocation9], 0 }
   0x3   :  { %15 = vsyncpa [#allocation4], 0 }
   0x4   :  { %16 = vsyncpa [#allocation12], 0  ;;  %s1279_s21 = smov [#allocation5]   ;;  %s1280_s23 = smov [#allocation2]  }
   0x5   :  { %s34_s22 = sshll.u32 %s1279_s21, 4  ;;  %s22_s24 = sshll.u32 %s1280_s23, 4  ;;  %s35_s22 = int_to_ptr.vmem [resolvable:$true] %s34_s22  ;;  %s23_s24 = int_to_ptr.vmem [resolvable:$true] %s22_s24 }
   0x6   :  { %s1157_s25 = scalar_lea.vmem %s35_s22, 512  ;;  %p1162_p1 = scmp.lt.s32.totalorder %s35_s22, %s35_s22 }
   0x7   :  { %p1158_p0 = scmp.ne.s32.totalorder %s35_s22, %s1157_s25  ;;  %p1163_p2 = scmp.lt.s32.totalorder %s1157_s25, %s1157_s25 }
   0x9   :  { %p1164_p3 = por %p1163_p2, %p1162_p1 }
   0xb   :  { %p1165_p4 = pnand %p1164_p3, %p1158_p0 }
   0xd   :  { %1168 = shalt.err (!%p1165_p4)
}
   0xe   :  { %s1281_s26 = smov 128   ;;  %s1282_s27 = smov 8  }
   0xf   :  { %40 = dma.hbm_to_vmem [thread:$0]  %s1432_s1, 512, %s35_s22, [#allocation6], %s1281_s26, %s1281_s26, %s1282_s27  }
  0x10   :  { %s1177_s30 = scalar_lea.vmem %s23_s24, 512  ;;  %p1182_p6 = scmp.lt.s32.totalorder %s23_s24, %s23_s24 }
  0x11   :  { %p1178_p5 = scmp.ne.s32.totalorder %s23_s24, %s1177_s30  ;;  %p1183_p7 = scmp.lt.s32.totalorder %s1177_s30, %s1177_s30 }
  0x13   :  { %p1184_p8 = por %p1183_p7, %p1182_p6 }
  0x15   :  { %p1185_p9 = pnand %p1184_p8, %p1178_p5 }
  0x17   :  { %1188 = shalt.err (!%p1185_p9)
}
  0x18   :  { %28 = dma.hbm_to_vmem [thread:$0]  %s1431_s0, 512, %s23_s24, [#allocation3], %s1281_s26, %s1281_s26, %s1282_s27  }
  0x19   :  { %s1283_s9 = smov [#allocation7]   ;;  %s1284_s11 = smov [#allocation8]  }
  0x1a   :  { %s46_s10 = sshll.u32 %s1283_s9, 4  ;;  %s58_s12 = sshll.u32 %s1284_s11, 4  ;;  %s47_s10 = int_to_ptr.vmem [resolvable:$true] %s46_s10  ;;  %s59_s12 = int_to_ptr.vmem [resolvable:$true] %s58_s12 }
  0x1b   :  { %s1197_s1 = scalar_lea.vmem %s47_s10, 512  ;;  %p1202_p11 = scmp.lt.s32.totalorder %s47_s10, %s47_s10 }
  0x1c   :  { %p1198_p10 = scmp.ne.s32.totalorder %s47_s10, %s1197_s1  ;;  %p1203_p12 = scmp.lt.s32.totalorder %s1197_s1, %s1197_s1 }
  0x1e   :  { %p1204_p13 = por %p1203_p12, %p1202_p11 }
  0x20   :  { %p1205_p0 = pnand %p1204_p13, %p1198_p10 }
  0x22   :  { %1208 = shalt.err (!%p1205_p0)
}
  0x23   :  { %52 = dma.hbm_to_vmem [thread:$0]  %s1433_s2, 512, %s47_s10, [#allocation6], %s1281_s26, %s1281_s26, %s1282_s27  }
  0x24   :  { %s1217_s0 = scalar_lea.vmem %s59_s12, 2048  ;;  %p1222_p2 = scmp.lt.s32.totalorder %s59_s12, %s59_s12 }
  0x25   :  { %p1218_p1 = scmp.ne.s32.totalorder %s59_s12, %s1217_s0  ;;  %p1223_p3 = scmp.lt.s32.totalorder %s1217_s0, %s1217_s0 }
  0x27   :  { %p1224_p4 = por %p1223_p3, %p1222_p2 }
  0x29   :  { %p1225_p5 = pnand %p1224_p4, %p1218_p1 }
  0x2b   :  { %1228 = shalt.err (!%p1225_p5)
}
  0x2c   :  { %64 = dma.hbm_to_vmem [thread:$0]  %s1434_s3, 2048, %s59_s12, [#allocation9], %s1281_s26, %s1281_s26, %s1282_s27  }
  0x2d   :  { %1269 = dma.done.wait [#allocation3], 512  }
  0x2e   :  { %1270 = vsyncadd [#allocation3], 4294966784 }
  0x2f   :  { %1271 = dma.done.wait [#allocation6], 1024  }
  0x30   :  { %1272 = vsyncadd [#allocation6], 4294966272 }
  0x31   :  { %1273 = dma.done.wait [#allocation9], 2048  }
  0x32   :  { %1274 = vsyncadd [#allocation9], 4294965248  ;;  %vm123_vm0 = vcmask 261120   ;;  %v94_v0 = vld [vmem:[#allocation8 + $0x18] sm:$0xff]  ;;  %v93_v1 = vld [vmem:[#allocation8 + $0x10] sm:$0xff]  ;;  %vm605_vm1 = vcmask 130048  }
  0x33   :  { %1041 = vmatprep.subr.mxu1 %v94_v0  ;;  %v79_v2 = vld [vmem:[#allocation2] sm:$0xff]  ;;  %v92_v3 = vld [vmem:[#allocation8 + $0x8] sm:$0xff]  ;;  %v104_v5 = vld [vmem:[#allocation8 + $0x58] sm:$0xff]  ;;  %s1285_s21 = smov [#allocation11]  }
  0x34   :  { %1042 = vmatpush3.msra.mxu1 %v94_v0  ;;  %1049 = vmatprep.mubr.msk.f32.mxu1 %vm123_vm0, %v79_v2  ;;  %v91_v4 = vld [vmem:[#allocation8] sm:$0xff]  ;;  %v80_v6 = vld [vmem:[#allocation2 + $0x8] sm:$0xff]  ;;  %v99_v7 = vld [vmem:[#allocation8 + $0x38] sm:$0xff]  ;;  %s940_s22 = sshll.u32 %s1285_s21, 4  ;;  %s941_s22 = int_to_ptr.vmem [resolvable:$true] %s940_s22 }
  0x35   :  { %1043 = vmatprep.subr.mxu1 %v93_v1  ;;  %1069 = vmatprep.subr.mxu0 %v104_v5  ;;  %v81_v8 = vld [vmem:[#allocation2 + $0x10] sm:$0xff]  ;;  %v82_v10 = vld [vmem:[#allocation2 + $0x18] sm:$0xff]  ;;  %v97_v11 = vld [vmem:[#allocation8 + $0x28] sm:$0xff]  ;;  %s1229_s23 = scalar_lea.vmem %s941_s22, 512  ;;  %p1234_p7 = scmp.lt.s32.totalorder %s941_s22, %s941_s22 }
  0x36   :  { %1044 = vmatpush3.msra.mxu1 %v93_v1  ;;  %1070 = vmatpush3.msra.mxu0 %v104_v5  ;;  %v98_v9 = vld [vmem:[#allocation8 + $0x30] sm:$0xff]  ;;  %v83_v12 = vld [vmem:[#allocation5] sm:$0xff]  ;;  %v84_v14 = vld [vmem:[#allocation5 + $0x8] sm:$0xff]  ;;  %p1230_p6 = scmp.ne.s32.totalorder %s941_s22, %s1229_s23  ;;  %p1235_p8 = scmp.lt.s32.totalorder %s1229_s23, %s1229_s23 }
  0x37   :  { %1045 = vmatprep.subr.mxu1 %v92_v3  ;;  %v96_v13 = vld [vmem:[#allocation8 + $0x20] sm:$0xff]  ;;  %v85_v15 = vld [vmem:[#allocation5 + $0x10] sm:$0xff]  ;;  %v86_v16 = vld [vmem:[#allocation5 + $0x18] sm:$0xff] }
  0x38   :  { %1046 = vmatpush3.msra.mxu1 %v92_v3  ;;  %v103_v17 = vld [vmem:[#allocation8 + $0x50] sm:$0xff]  ;;  %v102_v18 = vld [vmem:[#allocation8 + $0x48] sm:$0xff]  ;;  %v101_v19 = vld [vmem:[#allocation8 + $0x40] sm:$0xff]  ;;  %p1236_p9 = por %p1235_p8, %p1234_p7 }
  0x39   :  { %1047 = vmatprep.subr.mxu1 %v91_v4  ;;  %1071 = vmatprep.subr.mxu0 %v103_v17  ;;  %v87_v20 = vld [vmem:[#allocation7] sm:$0xff]  ;;  %v88_v21 = vld [vmem:[#allocation7 + $0x8] sm:$0xff]  ;;  %v89_v22 = vld [vmem:[#allocation7 + $0x10] sm:$0xff] }
  0x3a   :  { %1048 = vmatpush3.msra.mxu1 %v91_v4  ;;  %1072 = vmatpush3.msra.mxu0 %v103_v17  ;;  %v90_v23 = vld [vmem:[#allocation7 + $0x18] sm:$0xff]  ;;  %v961_v25 = vld [vmem:[%s1435_s4] ss:$0 sm:$0xff]  ;;  %v966_v31 = vld [vmem:[%s1435_s4 + $0x1] ss:$0 sm:$0xff]  ;;  %p1237_p10 = pnand %p1236_p9, %p1230_p6 }
  0x3b   :  { %1050 = vmatmul.mubr.msk.f32.vlgmr.msra.gmra.mxu1 %vm123_vm0, %v80_v6  ;;  %1055 = vmatprep.subr.mxu1 %v99_v7  ;;  %v1379_v46 = vld [vmem:[%s1435_s4 + $0x2] ss:$0 sm:$0xff] }
  0x3c   :  { %1056 = vmatpush3.msra.mxu1 %v99_v7  ;;  %1052 = vmatprep.mubr.msk.f32.mxu1 %vm123_vm0, %v81_v8 }
  0x3d   :  { %1057 = vmatprep.subr.mxu1 %v98_v9  ;;  %1073 = vmatprep.subr.mxu0 %v102_v18 }
  0x3e   :  { %1058 = vmatpush3.msra.mxu1 %v98_v9  ;;  %1074 = vmatpush3.msra.mxu0 %v102_v18  ;;  %v109_v18 = vld [vmem:[#allocation8 + $0x78] sm:$0xff] }
  0x3f   :  { %1053 = vmatmul.mubr.msk.f32.gmra.mxu1 %vm123_vm0, %v82_v10  ;;  %1059 = vmatprep.subr.mxu1 %v97_v11 }
  0x40   :  { %1060 = vmatpush3.msra.mxu1 %v97_v11  ;;  %1063 = vmatprep.mubr.msk.f32.mxu1 %vm123_vm0, %v83_v12 }
  0x41   :  { %1061 = vmatprep.subr.mxu1 %v96_v13  ;;  %1075 = vmatprep.subr.mxu0 %v101_v19 }
  0x42   :  { %1062 = vmatpush3.msra.mxu1 %v96_v13  ;;  %1076 = vmatpush3.msra.mxu0 %v101_v19  ;;  %v108_v19 = vld [vmem:[#allocation8 + $0x70] sm:$0xff] }
  0x43   :  { %1064 = vmatmul.mubr.msk.f32.vlgmr.msra.gmra.mxu1 %vm123_vm0, %v84_v14  ;;  %1077 = vmatprep.mubr.msk.f32.mxu0 %vm123_vm0, %v87_v20 }
  0x44   :  { %1066 = vmatprep.mubr.msk.f32.mxu1 %vm123_vm0, %v85_v15  ;;  %1078 = vmatmul.mubr.msk.f32.vlgmr.msra.gmra.mxu0 %vm123_vm0, %v88_v21 }
  0x45   :  { %1080 = vmatprep.mubr.msk.f32.mxu0 %vm123_vm0, %v89_v22 }
  0x47   :  { %1067 = vmatmul.mubr.msk.f32.gmra.mxu1 %vm123_vm0, %v86_v16 }
  0x48   :  { %1081 = vmatmul.mubr.msk.f32.gmra.mxu0 %vm123_vm0, %v90_v23 }
  0xfb   :  { %v1051_v24 = vpop.f32.mrf.mxu1 }
  0xfc   :  { %v208_v39 = vadd.f32 %v1051_v24, %v961_v25 }
  0xfd   :  { %v202_v26 = vpop.f32.mrf.mxu1 }
  0xfe   :  { %v203_v27 = vadd.f32 %v961_v25, %v202_v26  ;;  %v222_v43 = vmul.f32 0.17677669, %v208_v39 }
  0xff   :  { %v1054_v28 = vpop.f32.mrf.mxu1 }
 0x100   :  { %v221_v29 = vmul.f32 0.17677669, %v203_v27  ;;  %v218_v44 = vadd.f32 %v1054_v28, %v961_v25 }
 0x101   :  { %v212_v30 = vpop.f32.mrf.mxu1 }
 0x102   :  { %v213_v32 = vadd.f32 %v961_v25, %v212_v30  ;;  %1087 = vmatprep.mubr.msk.f32.mxu1 %vm123_vm0, %v221_v29  ;;  %v224_v45 = vmul.f32 0.17677669, %v218_v44 }
 0x103   :  { %v1065_v33 = vpop.f32.mrf.mxu1 }
 0x104   :  { %v223_v34 = vmul.f32 0.17677669, %v213_v32  ;;  %v315_v35 = vadd.f32 %v1065_v33, %v966_v31  ;;  %v1079_v47 = vpop.f32.mrf.mxu0  ;;  %v107_v33 = vld [vmem:[#allocation8 + $0x68] sm:$0xff] }
 0x105   :  { %v309_v36 = vpop.f32.mrf.mxu1  ;;  %v418_v48 = vadd.f32 %v1079_v47, %v1379_v46 }
 0x106   :  { %v310_v37 = vadd.f32 %v966_v31, %v309_v36  ;;  %1083 = vmatprep.subr.msk.mxu1 %vm123_vm0, %v315_v35  ;;  %1094 = vmatprep.mubr.msk.f32.mxu0 %vm123_vm0, %v223_v34  ;;  %v412_v49 = vpop.f32.mrf.mxu0  ;;  %v106_v34 = vld [vmem:[#allocation8 + $0x60] sm:$0xff] }
 0x107   :  { %v1068_v38 = vpop.f32.mrf.mxu1  ;;  %1084 = vmatpush3.xpose.msk.msra.mxu1 %vm123_vm0, %v315_v35  ;;  %v413_v50 = vadd.f32 %v1379_v46, %v412_v49 }
 0x108   :  { %v325_v40 = vadd.f32 %v1068_v38, %v966_v31  ;;  %1085 = vmatprep.subr.msk.mxu1 %vm123_vm0, %v310_v37  ;;  %v1082_v51 = vpop.f32.mrf.mxu0 }
 0x109   :  { %v319_v41 = vpop.f32.mrf.mxu1  ;;  %v1384_v52 = vadd.f32 %v1082_v51, %v1379_v46 }
 0x10a   :  { %v320_v42 = vadd.f32 %v966_v31, %v319_v41  ;;  %1090 = vmatprep.subr.msk.mxu0 %vm123_vm0, %v325_v40  ;;  %v1387_v54 = vpop.f32.mrf.mxu0 }
 0x10b   :  { %1086 = vmatpush3.xpose.msk.msra.mxu1 %vm123_vm0, %v310_v37  ;;  %1091 = vmatpush3.xpose.msk.msra.mxu0 %vm123_vm0, %v325_v40  ;;  %v423_v30 = vadd.f32 %v1379_v46, %v1387_v54 }
 0x10c   :  { %1092 = vmatprep.subr.msk.mxu0 %vm123_vm0, %v320_v42  ;;  %1097 = vmatprep.subr.mxu1 %v418_v48 }
 0x10e   :  { %1088 = vmatmul.mubr.msk.f32.vlgmr.msra.gmra.mxu1 %vm123_vm0, %v222_v43 }
 0x10f   :  { %1093 = vmatpush3.xpose.msk.msra.mxu0 %vm123_vm0, %v320_v42  ;;  %1098 = vmatpush3.msra.mxu1 %v418_v48 }
 0x110   :  { %1099 = vmatprep.subr.mxu1 %v413_v50  ;;  %1111 = vmatprep.subr.mxu0 %v109_v18 }
 0x111   :  { %1100 = vmatpush3.msra.mxu1 %v413_v50 }
 0x112   :  { %1095 = vmatmul.mubr.msk.f32.vlgmr.msra.gmra.mxu0 %vm123_vm0, %v224_v45  ;;  %1104 = vmatprep.subr.mxu1 %v1384_v52 }
 0x113   :  { %1112 = vmatpush3.msra.mxu0 %v109_v18 }
 0x114   :  { %1113 = vmatprep.subr.mxu0 %v108_v19 }
 0x115   :  { %1114 = vmatpush3.msra.mxu0 %v108_v19 }
 0x116   :  { %1115 = vmatprep.subr.mxu0 %v107_v33 }
 0x117   :  { %1116 = vmatpush3.msra.mxu0 %v107_v33 }
 0x118   :  { %1117 = vmatprep.subr.mxu0 %v106_v34 }
 0x119   :  { %1118 = vmatpush3.msra.mxu0 %v106_v34 }
 0x1ce   :  { %v1089_v53 = vpop.f32.mrf.mxu1 }
 0x1cf   :  { %v609_v60 = vsel %vm605_vm1, %v1089_v53, -inf }
 0x1d0   :  { %v509_v55 = vpop.f32.mrf.mxu1 }
 0x1d1   :  { %v606_v56 = vsel %vm605_vm1, %v509_v55, -inf }
 0x1d2   :  { %v1096_v57 = vpop.f32.mrf.mxu0  ;;  %607 = vmax.xlane.f32.xlu0 %v606_v56 }
 0x1d3   :  { %v615_v61 = vsel %vm605_vm1, %v1096_v57, -inf }
 0x1d4   :  { %v596_v58 = vpop.f32.mrf.mxu0 }
 0x1d5   :  { %v612_v59 = vsel %vm605_vm1, %v596_v58, -inf }
 0x1d6   :  { %613 = vmax.xlane.f32.xlu1 %v612_v59  ;;  %610 = vmax.xlane.f32.xlu0 %v609_v60 }
 0x1da   :  { %616 = vmax.xlane.f32.xlu1 %v615_v61 }
 0x25b   :  { %v608_v62 = vpop.xlane.xlu0 %607 }
 0x25c   :  { %v618_v63 = vsub.f32 %v509_v55, %v608_v62 }
 0x25e   :  { %v622_v0 = vmul.f32 1.442695, %v618_v63 }
 0x25f   :  { %v614_v1 = vpop.xlane.xlu1 %613  ;;  %v611_v2 = vpop.xlane.xlu0 %610 }
 0x260   :  { %1133 = vpow2.f32 %v622_v0  ;;  %v620_v3 = vsub.f32 %v596_v58, %v614_v1  ;;  %v619_v4 = vsub.f32 %v1089_v53, %v611_v2 }
 0x262   :  { %v626_v5 = vmul.f32 1.442695, %v620_v3  ;;  %v624_v6 = vmul.f32 1.442695, %v619_v4 }
 0x263   :  { %v617_v7 = vpop.xlane.xlu1 %616 }
 0x264   :  { %1135 = vpow2.f32 %v626_v5  ;;  %v621_v8 = vsub.f32 %v1096_v57, %v617_v7 }
 0x265   :  { %1137 = vpow2.f32 %v624_v6 }
 0x266   :  { %v628_v9 = vmul.f32 1.442695, %v621_v8 }
 0x268   :  { %1139 = vpow2.f32 %v628_v9 }
 0x26d   :  { %v1134_v10 = vpop.eup %1133 }
 0x26e   :  { %v630_v11 = vsel %vm605_vm1, %v1134_v10, 0.0 }
 0x26f   :  { %631 = vadd.xlane.f32.xlu0 %v630_v11 }
 0x271   :  { %v1136_v12 = vpop.eup %1135 }
 0x272   :  { %v1138_v13 = vpop.eup %1137  ;;  %v636_v14 = vsel %vm605_vm1, %v1136_v12, 0.0 }
 0x273   :  { %637 = vadd.xlane.f32.xlu0 %v636_v14  ;;  %v633_v15 = vsel %vm605_vm1, %v1138_v13, 0.0 }
 0x274   :  { %634 = vadd.xlane.f32.xlu1 %v633_v15 }
 0x275   :  { %v1140_v16 = vpop.eup %1139 }
 0x276   :  { %v639_v17 = vsel %vm605_vm1, %v1140_v16, 0.0 }
 0x278   :  { %640 = vadd.xlane.f32.xlu1 %v639_v17 }
 0x2f8   :  { %v632_v20 = vpop.xlane.xlu0 %631 }
 0x2f9   :  { %1141 = vrcp.f32 %v632_v20 }
 0x2fc   :  { %v638_v21 = vpop.xlane.xlu0 %637 }
 0x2fd   :  { %v635_v22 = vpop.xlane.xlu1 %634  ;;  %1143 = vrcp.f32 %v638_v21 }
 0x2fe   :  { %1145 = vrcp.f32 %v635_v22 }
 0x301   :  { %v641_v23 = vpop.xlane.xlu1 %640 }
 0x302   :  { %1147 = vrcp.f32 %v641_v23 }
 0x306   :  { %v1142_v24 = vpop.eup %1141 }
 0x307   :  { %v646_v25 = vmul.f32 %v1142_v24, %v1134_v10 }
 0x309   :  { %1101 = vmatprep.mubr.msk.f32.mxu1 %vm605_vm1, %v646_v25  ;;  %919 = vst.msk [vmem:[#allocation11] sm:$0xff] %vm605_vm1, %v646_v25 }
 0x30a   :  { %v1144_v26 = vpop.eup %1143 }
 0x30b   :  { %v1146_v27 = vpop.eup %1145  ;;  %v648_v28 = vmul.f32 %v1144_v26, %v1136_v12 }
 0x30c   :  { %v647_v29 = vmul.f32 %v1146_v27, %v1138_v13 }
 0x30d   :  { %921 = vst.msk [vmem:[#allocation11 + $0x10] sm:$0xff] %vm605_vm1, %v648_v28 }
 0x30e   :  { %1102 = vmatmul.mubr.msk.f32.vlgmr.msra.gmra.mxu1 %vm605_vm1, %v647_v29  ;;  %920 = vst.msk [vmem:[#allocation11 + $0x8] sm:$0xff] %vm605_vm1, %v647_v29 }
 0x30f   :  { %v1148_v31 = vpop.eup %1147  ;;  %1105 = vmatpush3.msra.mxu1 %v1384_v52  ;;  %1108 = vmatprep.mubr.msk.f32.mxu1 %vm605_vm1, %v648_v28 }
 0x310   :  { %1106 = vmatprep.subr.mxu1 %v423_v30  ;;  %v649_v32 = vmul.f32 %v1148_v31, %v1140_v16 }
 0x311   :  { %1107 = vmatpush3.msra.mxu1 %v423_v30 }
 0x312   :  { %1109 = vmatmul.mubr.msk.f32.vlgmr.msra.gmra.mxu1 %vm605_vm1, %v649_v32  ;;  %922 = vst.msk [vmem:[#allocation11 + $0x18] sm:$0xff] %vm605_vm1, %v649_v32 }
 0x3ce   :  { %v1103_v35 = vpop.f32.mrf.mxu1 }
 0x3d0   :  { %v722_v36 = vpop.f32.mrf.mxu1 }
 0x3d1   :  { %1119 = vmatprep.mubr.msk.f32.mxu0 %vm123_vm0, %v722_v36 }
 0x3d2   :  { %v1110_v37 = vpop.f32.mrf.mxu1  ;;  %1120 = vmatmul.mubr.msk.f32.vlgmr.msra.gmra.mxu0 %vm123_vm0, %v1103_v35 }
 0x3d4   :  { %v803_v38 = vpop.f32.mrf.mxu1 }
 0x3d5   :  { %1122 = vmatprep.mubr.msk.f32.mxu0 %vm123_vm0, %v803_v38 }
 0x3d6   :  { %1123 = vmatmul.mubr.msk.f32.gmra.mxu0 %vm123_vm0, %v1110_v37 }
 0x3d7   :  { %1240 = shalt.err (!%p1237_p10)
}
 0x3d8   :  { %946 = dma.vmem_to_hbm [thread:$0]  %s941_s22, 512, %s1437_s6, [#allocation12], %s1281_s26, %s1281_s26, %s1282_s27  }
 0x3d9   :  { %v988_v39 = vld [vmem:[%s1435_s4 + $0x3] ss:$0 sm:$0xff]  ;;  %s1286_s30 = smov [#allocation10]  }
 0x3da   :  { %s928_s7 = sshll.u32 %s1286_s30, 4  ;;  %s929_s7 = int_to_ptr.vmem [resolvable:$true] %s928_s7 }
 0x3db   :  { %s1249_s4 = scalar_lea.vmem %s929_s7, 512  ;;  %p1254_p12 = scmp.lt.s32.totalorder %s929_s7, %s929_s7 }
 0x3dc   :  { %p1250_p11 = scmp.ne.s32.totalorder %s929_s7, %s1249_s4  ;;  %p1255_p13 = scmp.lt.s32.totalorder %s1249_s4, %s1249_s4 }
 0x3de   :  { %p1256_p0 = por %p1255_p13, %p1254_p12 }
 0x3e0   :  { %p1257_p1 = pnand %p1256_p0, %p1250_p11 }
 0x492   :  { %v1121_v40 = vpop.f32.mrf.mxu0 }
 0x493   :  { %v902_v41 = vadd.f32 %v1121_v40, %v988_v39 }
 0x494   :  { %v896_v42 = vpop.f32.mrf.mxu0 }
 0x495   :  { %916 = vst.msk [vmem:[#allocation10 + $0x8] sm:$0xff] %vm123_vm0, %v902_v41  ;;  %v897_v43 = vadd.f32 %v988_v39, %v896_v42 }
 0x496   :  { %v1124_v44 = vpop.f32.mrf.mxu0 }
 0x497   :  { %915 = vst.msk [vmem:[#allocation10] sm:$0xff] %vm123_vm0, %v897_v43  ;;  %v912_v45 = vadd.f32 %v1124_v44, %v988_v39 }
 0x498   :  { %v906_v46 = vpop.f32.mrf.mxu0 }
 0x499   :  { %918 = vst.msk [vmem:[#allocation10 + $0x18] sm:$0xff] %vm123_vm0, %v912_v45  ;;  %v907_v47 = vadd.f32 %v988_v39, %v906_v46 }
 0x49b   :  { %917 = vst.msk [vmem:[#allocation10 + $0x10] sm:$0xff] %vm123_vm0, %v907_v47 }
 0x49c   :  { %1260 = shalt.err (!%p1257_p1)
}
 0x49d   :  { %934 = dma.vmem_to_hbm [thread:$0]  %s929_s7, 512, %s1436_s5, [#allocation4], %s1281_s26, %s1281_s26, %s1282_s27  }
 0x49e   :  { %1275 = dma.done.wait [#allocation4], 512  }
 0x49f   :  { %1276 = vsyncadd [#allocation4], 4294966784 }
 0x4a0   :  { %1277 = dma.done.wait [#allocation12], 512  }
 0x4a1   :  { %1278 = vsyncadd [#allocation12], 4294966784 }
 0x4a2   :  { %953 = vsyncpa [#allocation3], 1 }
 0x4a3   :  { %954 = vsyncpa [#allocation6], 1 }
 0x4a4   :  { %955 = vsyncpa [#allocation9], 1 }
 0x4a5   :  { %956 = vsyncpa [#allocation4], 1 }
 0x4a6   :  { %957 = vsyncpa [#allocation12], 1 }

</bundles_post_ra>
